<compile_context>
chip_gen: v6e
topology: v6e:2x2x1
jax: 0.10.0
libtpu: 0.0.40
codegen_flags: <defaults>
</compile_context>

<pallas_src>
import jax
import jax.numpy as jnp
from jax.experimental import pallas as pl
from jax.experimental.pallas import tpu as pltpu


LN_EPS = 1e-5


# --------------------------------------------------------------------------
# VMEM budget & tiling helpers
# --------------------------------------------------------------------------
def _round_up(x, m):
    return ((x + m - 1) // m) * m


def _vmem_budget_bytes():
    """Physical VMEM per core minus headroom for compiler scratch/semaphores.

    ~52 MiB on a 64 MiB part (v7x), ~109 MiB on 128 MiB parts (v5e/v6e)."""
    cap = 64 << 20  # conservative fallback: v7x physical VMEM per TensorCore
    try:
        info = pltpu.get_tpu_info()
        for attr in ("vmem_capacity_bytes", "vmem_bytes", "vmem_size_bytes"):
            val = getattr(info, attr, None)
            if val:
                cap = int(val)
                break
    except Exception:
        pass
    return min(cap - (12 << 20), int(cap * 0.85))


_VMEM_BUDGET = _vmem_budget_bytes()


def _choose_tile_f(f):
    """FF-hidden chunk (K-tiling of the FF matmuls); largest chunk <= 2048
    that divides F, else the whole hidden dim."""
    for cand in (2048, 1024, 512, 256, 128):
        if f % cand == 0:
            return cand
    return f


def _choose_tile_m(n, e, tile_f, vmem_budget):
    """Largest VMEM-affordable M tile (cap 1024), multiple of 256 when big
    (full-width MXU passes on v6e/v7x); small row counts stay as ONE tile."""
    n8 = _round_up(max(n, 8), 8)
    # Bytes that scale with tile_m per pipeline step:
    #   out block f32 x2 (double buffered) + x block f32 x2
    #   + xln bf16 scratch + acc f32 scratch + FF hidden intermediate f32
    per_row = (4 * 2 + 4 * 2 + 2 + 4) * e + 4 * tile_f
    # Weight blocks per step (double-buffered bf16 W1/W2 chunks) + slack.
    fixed = 2 * (2 * e * tile_f) * 2 + (4 << 20)
    tm_cap = max((vmem_budget - fixed) // per_row, 8)
    tm = min(n8, 1024, tm_cap)
    if tm >= 256:
        tm = (tm // 256) * 256
    else:
        tm = max((tm // 8) * 8, 8)
    n_pad = _round_up(n8, tm)
    return tm, n_pad


def _choose_tile_n(v, vmem_budget):
    """Lane-dense vocab tile; vocab is padded up to a multiple of it."""
    base = 1024 if vmem_budget >= (96 << 20) else 512   # bigger on 128MiB parts
    tile_n = min(base, _round_up(v, 128))
    v_pad = _round_up(v, tile_n)
    return tile_n, v_pad


# --------------------------------------------------------------------------
# Pallas kernels
# --------------------------------------------------------------------------
def _gpt2_blocks_kernel(x_ref, w1_ref, b1_ref, w2_ref, b2_ref,
                        g1_ref, be1_ref, g2_ref, be2_ref,
                        o_ref, xln_ref, acc_ref):
    """All transformer blocks fused.

    Grid = (M_tiles, num_layers, F_chunks); layer and F are "arbitrary"
    (inner) so the activation tile stays resident in the VMEM output block
    across layers and FF-hidden chunks.  Attention is a no-op (reference
    returns None), so each block is x = LN2(LN1(x) + FF(LN1(x))).
    """
    layer = pl.program_id(1)
    fi = pl.program_id(2)
    nf = pl.num_programs(2)

    @pl.when(jnp.logical_and(layer == 0, fi == 0))
    def _seed():
        # Seed the resident activation tile from the embedding slab.
        o_ref[...] = x_ref[...]

    @pl.when(fi == 0)
    def _ln1():
        x = o_ref[...].astype(jnp.float32)
        # Single-pass LayerNorm statistics (mean and mean-of-squares).
        mu = jnp.mean(x, axis=-1, keepdims=True)
        var = jnp.mean(x * x, axis=-1, keepdims=True) - mu * mu
        x_ln = (x - mu) * jax.lax.rsqrt(var + LN_EPS)
        x_ln = x_ln * g1_ref[...] + be1_ref[...]
        xln_ref[...] = x_ln.astype(jnp.bfloat16)      # cached fc1 operand
        acc_ref[...] = x_ln + b2_ref[...]             # residual + fc2 bias

    # FeedForward chunk over the hidden dim: bf16 operands, f32 accumulation.
    h = jnp.dot(xln_ref[...], w1_ref[...],
                preferred_element_type=jnp.float32) + b1_ref[...]
    h = jnp.maximum(h, 0.0)
    acc_ref[...] += jnp.dot(h.astype(jnp.bfloat16), w2_ref[...],
                            preferred_element_type=jnp.float32)

    @pl.when(fi == nf - 1)
    def _ln2():
        y = acc_ref[...]
        mu = jnp.mean(y, axis=-1, keepdims=True)
        var = jnp.mean(y * y, axis=-1, keepdims=True) - mu * mu
        y_ln = (y - mu) * jax.lax.rsqrt(var + LN_EPS)
        o_ref[...] = (y_ln * g2_ref[...] + be2_ref[...]).astype(o_ref.dtype)


def _final_linear_kernel(x_ref, w_ref, b_ref, o_ref):
    """Final projection tile: logits = x @ W + b (bf16 operands, f32 acc)."""
    o_ref[...] = (
        jnp.dot(x_ref[...].astype(jnp.bfloat16), w_ref[...],
                preferred_element_type=jnp.float32)
        + b_ref[...]
    ).astype(o_ref.dtype)


# --------------------------------------------------------------------------
# Wrappers
# --------------------------------------------------------------------------
def transformer_stack(x, params, *, tile_m, tile_f, vmem_limit):
    """x: (N_pad, E) f32.  Stacked per-layer weights; one fused pallas_call."""
    n, e = x.shape
    num_layers, _, f = params["w1"].shape
    assert n % tile_m == 0 and f % tile_f == 0
    m_tiles, f_tiles = n // tile_m, f // tile_f
    grid = (m_tiles, num_layers, f_tiles)

    x_spec = pl.BlockSpec((tile_m, e), lambda i, l, fi: (i, 0))
    w1_spec = pl.BlockSpec((None, e, tile_f), lambda i, l, fi: (l, 0, fi))
    b1_spec = pl.BlockSpec((None, 1, tile_f), lambda i, l, fi: (l, 0, fi))
    w2_spec = pl.BlockSpec((None, tile_f, e), lambda i, l, fi: (l, fi, 0))
    vec_spec = pl.BlockSpec((None, 1, e), lambda i, l, fi: (l, 0, 0))

    flops = 4 * n * e * f * num_layers                    # two matmuls/layer
    weight_bytes = num_layers * 2 * e * f * 2             # W1 + W2 in bf16
    bytes_accessed = (m_tiles * weight_bytes              # re-streamed per M tile
                      + num_layers * 4 * (f + 5 * e)      # biases + LN params
                      + 2 * n * e * 4)                    # activation in + out

    return pl.pallas_call(
        _gpt2_blocks_kernel,
        out_shape=jax.ShapeDtypeStruct((n, e), jnp.float32),
        grid_spec=pltpu.PrefetchScalarGridSpec(
            num_scalar_prefetch=0,
            grid=grid,
            in_specs=[
                x_spec,                 # embeddings (read only at layer 0)
                w1_spec, b1_spec,       # fc1 chunk
                w2_spec, vec_spec,      # fc2 chunk (+ bias)
                vec_spec, vec_spec,     # ln1 gamma/beta
                vec_spec, vec_spec,     # ln2 gamma/beta
            ],
            out_specs=pl.BlockSpec((tile_m, e), lambda i, l, fi: (i, 0)),
            scratch_shapes=[
                pltpu.VMEM((tile_m, e), jnp.bfloat16),    # cached LN1 output
                pltpu.VMEM((tile_m, e), jnp.float32),     # FF accumulator
            ],
        ),
        compiler_params=pltpu.CompilerParams(
            dimension_semantics=("parallel", "arbitrary", "arbitrary"),
            vmem_limit_bytes=vmem_limit),
        cost_estimate=pl.CostEstimate(
            flops=flops, transcendentals=0, bytes_accessed=bytes_accessed),
        input_output_aliases={0: 0},    # activation slab reuses the x buffer
    )(x, params["w1"], params["b1"], params["w2"], params["b2"],
      params["ln1_g"], params["ln1_b"], params["ln2_g"], params["ln2_b"])


def final_linear(x, w, b, *, tile_m, tile_n, vmem_limit):
    """x: (N_pad, E) f32, w: (E, V_pad) bf16, b: (1, V_pad) f32."""
    n, e = x.shape
    v = w.shape[1]
    assert n % tile_m == 0 and v % tile_n == 0
    m_tiles, v_tiles = n // tile_m, v // tile_n

    # Pick the grid order that minimizes HBM re-streaming: keep the (E, V)
    # weight resident (vocab outer) when the activation slab is the cheaper
    # re-stream, otherwise keep rows outer so weights stream only M_tiles
    # times (often once, since tile_m is large).
    act_bytes = n * e * 4
    w_bytes = e * v * 2
    weight_resident = (m_tiles - 1) * w_bytes > (v_tiles - 1) * act_bytes

    if weight_resident:
        grid = (v_tiles, m_tiles)                      # vocab outer, rows inner
        x_spec = pl.BlockSpec((tile_m, e), lambda j, i: (i, 0))
        w_spec = pl.BlockSpec((e, tile_n), lambda j, i: (0, j))
        b_spec = pl.BlockSpec((1, tile_n), lambda j, i: (0, j))
        o_spec = pl.BlockSpec((tile_m, tile_n), lambda j, i: (i, j))
        bytes_accessed = w_bytes + v * 4 + v_tiles * act_bytes + n * v * 4
    else:
        grid = (m_tiles, v_tiles)                      # rows outer, vocab inner
        x_spec = pl.BlockSpec((tile_m, e), lambda i, j: (i, 0))
        w_spec = pl.BlockSpec((e, tile_n), lambda i, j: (0, j))
        b_spec = pl.BlockSpec((1, tile_n), lambda i, j: (0, j))
        o_spec = pl.BlockSpec((tile_m, tile_n), lambda i, j: (i, j))
        bytes_accessed = m_tiles * w_bytes + v * 4 + act_bytes + n * v * 4

    return pl.pallas_call(
        _final_linear_kernel,
        out_shape=jax.ShapeDtypeStruct((n, v), jnp.float32),
        grid_spec=pltpu.PrefetchScalarGridSpec(
            num_scalar_prefetch=0,
            grid=grid,
            in_specs=[x_spec, w_spec, b_spec],
            out_specs=o_spec,
        ),
        compiler_params=pltpu.CompilerParams(
            dimension_semantics=("parallel", "parallel"),
            vmem_limit_bytes=vmem_limit),
        cost_estimate=pl.CostEstimate(
            flops=2 * n * e * v, transcendentals=0,
            bytes_accessed=bytes_accessed),
    )(x, w, b)


def _gpt2_forward_impl(tokens, params):
    """tokens: (B, S) int32.  Returns logits (B, S, vocab) float32."""
    b, s = tokens.shape
    e = params["tok_emb"].shape[1]
    v = params["w_out"].shape[1]
    f = params["w1"].shape[-1]
    vmem_budget = _VMEM_BUDGET

    # Token + positional embedding (gather: plain-JAX glue around the kernels).
    tok = jnp.take(params["tok_emb"], tokens, axis=0)          # (B, S, E)
    pos = params["pos_emb"][:s][None, :, :]                    # (1, S, E)
    x = (tok + pos).reshape(b * s, e)                          # (N, E)

    n = b * s
    tile_f = _choose_tile_f(f)
    tile_m, n_pad = _choose_tile_m(n, e, tile_f, vmem_budget)
    if n_pad != n:
        x = jnp.pad(x, ((0, n_pad - n), (0, 0)))

    x = transformer_stack(x, params, tile_m=tile_m, tile_f=tile_f,
                          vmem_limit=vmem_budget)

    # Pad the vocab to a lane-dense multiple of the vocab tile (e.g. 50257 ->
    # 50688) so stores are unmasked and weight blocks stay VMEM-sized.
    tile_n, v_pad = _choose_tile_n(v, vmem_budget)
    w_out, b_out = params["w_out"], params["b_out"]
    if v_pad != v:
        w_out = jnp.pad(w_out, ((0, 0), (0, v_pad - v)))
        b_out = jnp.pad(b_out, ((0, 0), (0, v_pad - v)))

    logits = final_linear(x, w_out, b_out, tile_m=tile_m, tile_n=tile_n,
                          vmem_limit=vmem_budget)
    return logits[:n, :v].reshape(b, s, v)


_gpt2_forward_jit = jax.jit(_gpt2_forward_impl)


def gpt2_forward(tokens, params, mask=None):
    del mask  # unused by the reference forward
    return _gpt2_forward_jit(tokens, params)


# --------------------------------------------------------------------------
# Deterministic parameter init (weights stacked along a leading layer axis)
# --------------------------------------------------------------------------
def init_params(key, *, vocab_size, embed_size, max_len, ff_hidden_size,
                num_layers):
    ks = jax.random.split(key, 5)

    def dense(k, fan_in, fan_out, extra=()):
        # nn.Linear stores (out, in); we keep the pre-transposed (in, out).
        # Weights are bf16 (f32 accumulation) — deliberate divergence from an
        # f32 PyTorch reference for MXU rate / DMA bytes.
        scale = 1.0 / jnp.sqrt(fan_in)
        w = jax.random.uniform(k, extra + (fan_in, fan_out), jnp.float32,
                               -scale, scale)
        return w.astype(jnp.bfloat16)

    return {
        "tok_emb": jax.random.normal(ks[0], (vocab_size, embed_size),
                                     jnp.float32),
        "pos_emb": jax.random.normal(ks[1], (max_len, embed_size),
                                     jnp.float32),
        # Per-layer weights stacked: leading axis = layer.
        "w1": dense(ks[2], embed_size, ff_hidden_size, (num_layers,)),
        "b1": jnp.zeros((num_layers, 1, ff_hidden_size), jnp.float32),
        "w2": dense(ks[3], ff_hidden_size, embed_size, (num_layers,)),
        "b2": jnp.zeros((num_layers, 1, embed_size), jnp.float32),
        "ln1_g": jnp.ones((num_layers, 1, embed_size), jnp.float32),
        "ln1_b": jnp.zeros((num_layers, 1, embed_size), jnp.float32),
        "ln2_g": jnp.ones((num_layers, 1, embed_size), jnp.float32),
        "ln2_b": jnp.zeros((num_layers, 1, embed_size), jnp.float32),
        "w_out": dense(ks[4], embed_size, vocab_size),
        "b_out": jnp.zeros((1, vocab_size), jnp.float32),
    }


# --------------------------------------------------------------------------
if __name__ == "__main__":
    # Small, TPU-friendly shapes consistent with the module's forward.
    VOCAB = 512
    EMBED = 128
    MAX_LEN = 16
    FF_HIDDEN = 256
    NUM_LAYERS = 2
    BATCH = 2
    SEQ = 8

    key = jax.random.PRNGKey(0)
    k_params, k_tokens = jax.random.split(key)

    params = init_params(k_params, vocab_size=VOCAB, embed_size=EMBED,
                         max_len=MAX_LEN, ff_hidden_size=FF_HIDDEN,
                         num_layers=NUM_LAYERS)
    tokens = jax.random.randint(k_tokens, (BATCH, SEQ), 0, VOCAB, jnp.int32)

    logits = gpt2_forward(tokens, params, mask=None)
    jax.block_until_ready(logits)

    assert logits.shape == (BATCH, SEQ, VOCAB), logits.shape
    assert logits.dtype == jnp.float32
    assert bool(jnp.all(jnp.isfinite(logits)))
    print("KERNEL_OK")
</pallas_src>

<mosaic_0001>
module attributes {stable_mosaic.version = 11 : i64} {
  func.func @_final_linear_kernel(%arg0: i32, %arg1: i32, %arg2: memref<16x128xf32, #tpu.memory_space<vmem>>, %arg3: memref<128x512xbf16, #tpu.memory_space<vmem>>, %arg4: memref<1x512xf32, #tpu.memory_space<vmem>>, %arg5: memref<16x512xf32, #tpu.memory_space<vmem>>) attributes {dimension_semantics = [#tpu.dimension_semantics<parallel>, #tpu.dimension_semantics<parallel>], iteration_bounds = array<i64: 1, 1>, scalar_prefetch = 0 : i64, scratch_operands = 0 : i64, tpu.core_type = #tpu.core_type<tc>, window_params = [{transform_indices = @transform_0, window_bounds = array<i64: 16, 128>}, {transform_indices = @transform_1, window_bounds = array<i64: 128, 512>}, {transform_indices = @transform_2, window_bounds = array<i64: 1, 512>}, {transform_indices = @transform_3, window_bounds = array<i64: 16, 512>}]} {
    %c0 = arith.constant 0 : index
    %c0_0 = arith.constant 0 : index
    %0 = vector.load %arg2[%c0, %c0_0] : memref<16x128xf32, #tpu.memory_space<vmem>>, vector<16x128xf32>
    %1 = arith.truncf %0 : vector<16x128xf32> to vector<16x128xbf16>
    %c0_1 = arith.constant 0 : index
    %c0_2 = arith.constant 0 : index
    %2 = vector.load %arg3[%c0_1, %c0_2] : memref<128x512xbf16, #tpu.memory_space<vmem>>, vector<128x512xbf16>
    %cst = arith.constant dense<0.000000e+00> : vector<16x512xf32>
    %3 = tpu.matmul %1, %2, %cst {dimension_numbers = #tpu.dot_dimension_numbers<[1], [0], [0], [1], [0, 0, 1, 1], [], []>} : vector<16x128xbf16>, vector<128x512xbf16>, vector<16x512xf32> -> vector<16x512xf32>
    %c0_3 = arith.constant 0 : index
    %c0_4 = arith.constant 0 : index
    %4 = vector.load %arg4[%c0_3, %c0_4] : memref<1x512xf32, #tpu.memory_space<vmem>>, vector<1x512xf32>
    %5 = vector.broadcast %4 : vector<1x512xf32> to vector<16x512xf32>
    %6 = arith.addf %3, %5 : vector<16x512xf32>
    %c0_5 = arith.constant 0 : index
    %c0_6 = arith.constant 0 : index
    %7 = vector.load %arg5[%c0_5, %c0_6] : memref<16x512xf32, #tpu.memory_space<vmem>>, vector<16x512xf32>
    tpu.vector_store %arg5[%c0_5, %c0_6], %6 {strides = array<i32>} : memref<16x512xf32, #tpu.memory_space<vmem>>, vector<16x512xf32>,
    return
  }
  func.func @transform_0(%arg0: i32, %arg1: i32) -> (i32, i32) {
    %c0_i32 = arith.constant 0 : i32
    %c0_i32_0 = arith.constant 0 : i32
    return %arg0, %c0_i32 : i32, i32
  }
  func.func @transform_1(%arg0: i32, %arg1: i32) -> (i32, i32) {
    %c0_i32 = arith.constant 0 : i32
    %c0_i32_0 = arith.constant 0 : i32
    return %c0_i32, %arg1 : i32, i32
  }
  func.func @transform_2(%arg0: i32, %arg1: i32) -> (i32, i32) {
    %c0_i32 = arith.constant 0 : i32
    %c0_i32_0 = arith.constant 0 : i32
    return %c0_i32, %arg1 : i32, i32
  }
  func.func @transform_3(%arg0: i32, %arg1: i32) -> (i32, i32) {
    %c0_i32 = arith.constant 0 : i32
    return %arg0, %arg1 : i32, i32
  }
}

module attributes {stable_mosaic.version = 11 : i64} {
  func.func @_gpt2_blocks_kernel(%arg0: i32, %arg1: i32, %arg2: i32, %arg3: memref<16x128xf32, #tpu.memory_space<vmem>>, %arg4: memref<1x128x256xbf16, #tpu.memory_space<vmem>>, %arg5: memref<1x1x256xf32, #tpu.memory_space<vmem>>, %arg6: memref<1x256x128xbf16, #tpu.memory_space<vmem>>, %arg7: memref<1x1x128xf32, #tpu.memory_space<vmem>>, %arg8: memref<1x1x128xf32, #tpu.memory_space<vmem>>, %arg9: memref<1x1x128xf32, #tpu.memory_space<vmem>>, %arg10: memref<1x1x128xf32, #tpu.memory_space<vmem>>, %arg11: memref<1x1x128xf32, #tpu.memory_space<vmem>>, %arg12: memref<16x128xf32, #tpu.memory_space<vmem>>, %arg13: memref<16x128xbf16, #tpu.memory_space<vmem>>, %arg14: memref<16x128xf32, #tpu.memory_space<vmem>>) attributes {dimension_semantics = [#tpu.dimension_semantics<parallel>, #tpu.dimension_semantics<arbitrary>, #tpu.dimension_semantics<arbitrary>], iteration_bounds = array<i64: 1, 2, 1>, scalar_prefetch = 0 : i64, scratch_operands = 2 : i64, tpu.core_type = #tpu.core_type<tc>, window_params = [{transform_indices = @transform_0, window_bounds = array<i64: 16, 128>}, {transform_indices = @transform_1, window_bounds = array<i64: 1, 128, 256>}, {transform_indices = @transform_2, window_bounds = array<i64: 1, 1, 256>}, {transform_indices = @transform_3, window_bounds = array<i64: 1, 256, 128>}, {transform_indices = @transform_4, window_bounds = array<i64: 1, 1, 128>}, {transform_indices = @transform_5, window_bounds = array<i64: 1, 1, 128>}, {transform_indices = @transform_6, window_bounds = array<i64: 1, 1, 128>}, {transform_indices = @transform_7, window_bounds = array<i64: 1, 1, 128>}, {transform_indices = @transform_8, window_bounds = array<i64: 1, 1, 128>}, {transform_indices = @transform_9, window_bounds = array<i64: 16, 128>}]} {
    %c0_i32 = arith.constant 0 : i32
    %0 = arith.cmpi eq, %arg1, %c0_i32 : i32
    %c0_i32_0 = arith.constant 0 : i32
    %1 = arith.cmpi eq, %arg2, %c0_i32_0 : i32
    %2 = arith.andi %0, %1 : i1
    %3 = arith.extui %2 : i1 to i32
    %c0_i32_1 = arith.constant 0 : i32
    %4 = arith.cmpi ne, %3, %c0_i32_1 : i32
    scf.if %4 {
      %c0_22 = arith.constant 0 : index
      %c0_23 = arith.constant 0 : index
      %28 = vector.load %arg3[%c0_22, %c0_23] : memref<16x128xf32, #tpu.memory_space<vmem>>, vector<16x128xf32>
      %c0_24 = arith.constant 0 : index
      %c0_25 = arith.constant 0 : index
      %29 = vector.load %arg12[%c0_24, %c0_25] : memref<16x128xf32, #tpu.memory_space<vmem>>, vector<16x128xf32>
      tpu.vector_store %arg12[%c0_24, %c0_25], %28 {strides = array<i32>} : memref<16x128xf32, #tpu.memory_space<vmem>>, vector<16x128xf32>,
    } else {
    }
    %c0_i32_2 = arith.constant 0 : i32
    %5 = arith.cmpi eq, %arg2, %c0_i32_2 : i32
    %6 = arith.extui %5 : i1 to i32
    %c0_i32_3 = arith.constant 0 : i32
    %7 = arith.cmpi ne, %6, %c0_i32_3 : i32
    scf.if %7 {
      %c0_22 = arith.constant 0 : index
      %c0_23 = arith.constant 0 : index
      %28 = vector.load %arg12[%c0_22, %c0_23] : memref<16x128xf32, #tpu.memory_space<vmem>>, vector<16x128xf32>
      %cst_24 = arith.constant dense<0.000000e+00> : vector<16xf32>
      %29 = vector.multi_reduction <add>, %28, %cst_24 [1] : vector<16x128xf32> to vector<16xf32>
      %30 = vector.shape_cast %29 : vector<16xf32> to vector<16x1xf32>
      %cst_25 = arith.constant 1.280000e+02 : f32
      %31 = vector.broadcast %cst_25 : f32 to vector<16x1xf32>
      %32 = arith.divf %30, %31 : vector<16x1xf32>
      %33 = arith.mulf %28, %28 : vector<16x128xf32>
      %cst_26 = arith.constant dense<0.000000e+00> : vector<16xf32>
      %34 = vector.multi_reduction <add>, %33, %cst_26 [1] : vector<16x128xf32> to vector<16xf32>
      %35 = vector.shape_cast %34 : vector<16xf32> to vector<16x1xf32>
      %cst_27 = arith.constant 1.280000e+02 : f32
      %36 = vector.broadcast %cst_27 : f32 to vector<16x1xf32>
      %37 = arith.divf %35, %36 : vector<16x1xf32>
      %38 = arith.mulf %32, %32 : vector<16x1xf32>
      %39 = arith.subf %37, %38 : vector<16x1xf32>
      %40 = vector.broadcast %32 : vector<16x1xf32> to vector<16x128xf32>
      %41 = arith.subf %28, %40 : vector<16x128xf32>
      %cst_28 = arith.constant 9.99999974E-6 : f32
      %42 = vector.broadcast %cst_28 : f32 to vector<16x1xf32>
      %43 = arith.addf %39, %42 : vector<16x1xf32>
      %44 = math.rsqrt %43 : vector<16x1xf32>
      %45 = vector.broadcast %44 : vector<16x1xf32> to vector<16x128xf32>
      %46 = arith.mulf %41, %45 : vector<16x128xf32>
      %c0_29 = arith.constant 0 : index
      %c0_30 = arith.constant 0 : index
      %c0_31 = arith.constant 0 : index
      %47 = vector.load %arg8[%c0_29, %c0_30, %c0_31] : memref<1x1x128xf32, #tpu.memory_space<vmem>>, vector<1x1x128xf32>
      %48 = vector.shape_cast %47 : vector<1x1x128xf32> to vector<1x128xf32>
      %49 = vector.broadcast %48 : vector<1x128xf32> to vector<16x128xf32>
      %50 = arith.mulf %46, %49 : vector<16x128xf32>
      %c0_32 = arith.constant 0 : index
      %c0_33 = arith.constant 0 : index
      %c0_34 = arith.constant 0 : index
      %51 = vector.load %arg9[%c0_32, %c0_33, %c0_34] : memref<1x1x128xf32, #tpu.memory_space<vmem>>, vector<1x1x128xf32>
      %52 = vector.shape_cast %51 : vector<1x1x128xf32> to vector<1x128xf32>
      %53 = vector.broadcast %52 : vector<1x128xf32> to vector<16x128xf32>
      %54 = arith.addf %50, %53 : vector<16x128xf32>
      %55 = arith.truncf %54 : vector<16x128xf32> to vector<16x128xbf16>
      %c0_35 = arith.constant 0 : index
      %c0_36 = arith.constant 0 : index
      %56 = vector.load %arg13[%c0_35, %c0_36] : memref<16x128xbf16, #tpu.memory_space<vmem>>, vector<16x128xbf16>
      tpu.vector_store %arg13[%c0_35, %c0_36], %55 {strides = array<i32>} : memref<16x128xbf16, #tpu.memory_space<vmem>>, vector<16x128xbf16>,
      %c0_37 = arith.constant 0 : index
      %c0_38 = arith.constant 0 : index
      %c0_39 = arith.constant 0 : index
      %57 = vector.load %arg7[%c0_37, %c0_38, %c0_39] : memref<1x1x128xf32, #tpu.memory_space<vmem>>, vector<1x1x128xf32>
      %58 = vector.shape_cast %57 : vector<1x1x128xf32> to vector<1x128xf32>
      %59 = vector.broadcast %58 : vector<1x128xf32> to vector<16x128xf32>
      %60 = arith.addf %54, %59 : vector<16x128xf32>
      %c0_40 = arith.constant 0 : index
      %c0_41 = arith.constant 0 : index
      %61 = vector.load %arg14[%c0_40, %c0_41] : memref<16x128xf32, #tpu.memory_space<vmem>>, vector<16x128xf32>
      tpu.vector_store %arg14[%c0_40, %c0_41], %60 {strides = array<i32>} : memref<16x128xf32, #tpu.memory_space<vmem>>, vector<16x128xf32>,
    } else {
    }
    %c0 = arith.constant 0 : index
    %c0_4 = arith.constant 0 : index
    %8 = vector.load %arg13[%c0, %c0_4] : memref<16x128xbf16, #tpu.memory_space<vmem>>, vector<16x128xbf16>
    %c0_5 = arith.constant 0 : index
    %c0_6 = arith.constant 0 : index
    %c0_7 = arith.constant 0 : index
    %9 = vector.load %arg4[%c0_5, %c0_6, %c0_7] : memref<1x128x256xbf16, #tpu.memory_space<vmem>>, vector<1x128x256xbf16>
    %10 = vector.shape_cast %9 : vector<1x128x256xbf16> to vector<128x256xbf16>
    %cst = arith.constant dense<0.000000e+00> : vector<16x256xf32>
    %11 = tpu.matmul %8, %10, %cst {dimension_numbers = #tpu.dot_dimension_numbers<[1], [0], [0], [1], [0, 0, 1, 1], [], []>} : vector<16x128xbf16>, vector<128x256xbf16>, vector<16x256xf32> -> vector<16x256xf32>
    %c0_8 = arith.constant 0 : index
    %c0_9 = arith.constant 0 : index
    %c0_10 = arith.constant 0 : index
    %12 = vector.load %arg5[%c0_8, %c0_9, %c0_10] : memref<1x1x256xf32, #tpu.memory_space<vmem>>, vector<1x1x256xf32>
    %13 = vector.shape_cast %12 : vector<1x1x256xf32> to vector<1x256xf32>
    %14 = vector.broadcast %13 : vector<1x256xf32> to vector<16x256xf32>
    %15 = arith.addf %11, %14 : vector<16x256xf32>
    %cst_11 = arith.constant 0.000000e+00 : f32
    %16 = vector.broadcast %cst_11 : f32 to vector<16x256xf32>
    %17 = arith.maximumf %15, %16 : vector<16x256xf32>
    %c0_12 = arith.constant 0 : index
    %c0_13 = arith.constant 0 : index
    %18 = vector.load %arg14[%c0_12, %c0_13] : memref<16x128xf32, #tpu.memory_space<vmem>>, vector<16x128xf32>
    %19 = arith.truncf %17 : vector<16x256xf32> to vector<16x256xbf16>
    %c0_14 = arith.constant 0 : index
    %c0_15 = arith.constant 0 : index
    %c0_16 = arith.constant 0 : index
    %20 = vector.load %arg6[%c0_14, %c0_15, %c0_16] : memref<1x256x128xbf16, #tpu.memory_space<vmem>>, vector<1x256x128xbf16>
    %21 = vector.shape_cast %20 : vector<1x256x128xbf16> to vector<256x128xbf16>
    %cst_17 = arith.constant dense<0.000000e+00> : vector<16x128xf32>
    %22 = tpu.matmul %19, %21, %cst_17 {dimension_numbers = #tpu.dot_dimension_numbers<[1], [0], [0], [1], [0, 0, 1, 1], [], []>} : vector<16x256xbf16>, vector<256x128xbf16>, vector<16x128xf32> -> vector<16x128xf32>
    %23 = arith.addf %18, %22 : vector<16x128xf32>
    %c0_18 = arith.constant 0 : index
    %c0_19 = arith.constant 0 : index
    %24 = vector.load %arg14[%c0_18, %c0_19] : memref<16x128xf32, #tpu.memory_space<vmem>>, vector<16x128xf32>
    tpu.vector_store %arg14[%c0_18, %c0_19], %23 {strides = array<i32>} : memref<16x128xf32, #tpu.memory_space<vmem>>, vector<16x128xf32>,
    %c0_i32_20 = arith.constant 0 : i32
    %25 = arith.cmpi eq, %arg2, %c0_i32_20 : i32
    %26 = arith.extui %25 : i1 to i32
    %c0_i32_21 = arith.constant 0 : i32
    %27 = arith.cmpi ne, %26, %c0_i32_21 : i32
    scf.if %27 {
      %c0_22 = arith.constant 0 : index
      %c0_23 = arith.constant 0 : index
      %28 = vector.load %arg14[%c0_22, %c0_23] : memref<16x128xf32, #tpu.memory_space<vmem>>, vector<16x128xf32>
      %cst_24 = arith.constant dense<0.000000e+00> : vector<16xf32>
      %29 = vector.multi_reduction <add>, %28, %cst_24 [1] : vector<16x128xf32> to vector<16xf32>
      %30 = vector.shape_cast %29 : vector<16xf32> to vector<16x1xf32>
      %cst_25 = arith.constant 1.280000e+02 : f32
      %31 = vector.broadcast %cst_25 : f32 to vector<16x1xf32>
      %32 = arith.divf %30, %31 : vector<16x1xf32>
      %33 = arith.mulf %28, %28 : vector<16x128xf32>
      %cst_26 = arith.constant dense<0.000000e+00> : vector<16xf32>
      %34 = vector.multi_reduction <add>, %33, %cst_26 [1] : vector<16x128xf32> to vector<16xf32>
      %35 = vector.shape_cast %34 : vector<16xf32> to vector<16x1xf32>
      %cst_27 = arith.constant 1.280000e+02 : f32
      %36 = vector.broadcast %cst_27 : f32 to vector<16x1xf32>
      %37 = arith.divf %35, %36 : vector<16x1xf32>
      %38 = arith.mulf %32, %32 : vector<16x1xf32>
      %39 = arith.subf %37, %38 : vector<16x1xf32>
      %40 = vector.broadcast %32 : vector<16x1xf32> to vector<16x128xf32>
      %41 = arith.subf %28, %40 : vector<16x128xf32>
      %cst_28 = arith.constant 9.99999974E-6 : f32
      %42 = vector.broadcast %cst_28 : f32 to vector<16x1xf32>
      %43 = arith.addf %39, %42 : vector<16x1xf32>
      %44 = math.rsqrt %43 : vector<16x1xf32>
      %45 = vector.broadcast %44 : vector<16x1xf32> to vector<16x128xf32>
      %46 = arith.mulf %41, %45 : vector<16x128xf32>
      %c0_29 = arith.constant 0 : index
      %c0_30 = arith.constant 0 : index
      %c0_31 = arith.constant 0 : index
      %47 = vector.load %arg10[%c0_29, %c0_30, %c0_31] : memref<1x1x128xf32, #tpu.memory_space<vmem>>, vector<1x1x128xf32>
      %48 = vector.shape_cast %47 : vector<1x1x128xf32> to vector<1x128xf32>
      %49 = vector.broadcast %48 : vector<1x128xf32> to vector<16x128xf32>
      %50 = arith.mulf %46, %49 : vector<16x128xf32>
      %c0_32 = arith.constant 0 : index
      %c0_33 = arith.constant 0 : index
      %c0_34 = arith.constant 0 : index
      %51 = vector.load %arg11[%c0_32, %c0_33, %c0_34] : memref<1x1x128xf32, #tpu.memory_space<vmem>>, vector<1x1x128xf32>
      %52 = vector.shape_cast %51 : vector<1x1x128xf32> to vector<1x128xf32>
      %53 = vector.broadcast %52 : vector<1x128xf32> to vector<16x128xf32>
      %54 = arith.addf %50, %53 : vector<16x128xf32>
      %c0_35 = arith.constant 0 : index
      %c0_36 = arith.constant 0 : index
      %55 = vector.load %arg12[%c0_35, %c0_36] : memref<16x128xf32, #tpu.memory_space<vmem>>, vector<16x128xf32>
      tpu.vector_store %arg12[%c0_35, %c0_36], %54 {strides = array<i32>} : memref<16x128xf32, #tpu.memory_space<vmem>>, vector<16x128xf32>,
    } else {
    }
    return
  }
  func.func @transform_0(%arg0: i32, %arg1: i32, %arg2: i32) -> (i32, i32) {
    %c0_i32 = arith.constant 0 : i32
    %c0_i32_0 = arith.constant 0 : i32
    return %arg0, %c0_i32 : i32, i32
  }
  func.func @transform_1(%arg0: i32, %arg1: i32, %arg2: i32) -> (i32, i32, i32) {
    %c0_i32 = arith.constant 0 : i32
    %c0_i32_0 = arith.constant 0 : i32
    return %arg1, %c0_i32, %arg2 : i32, i32, i32
  }
  func.func @transform_2(%arg0: i32, %arg1: i32, %arg2: i32) -> (i32, i32, i32) {
    %c0_i32 = arith.constant 0 : i32
    %c0_i32_0 = arith.constant 0 : i32
    return %arg1, %c0_i32, %arg2 : i32, i32, i32
  }
  func.func @transform_3(%arg0: i32, %arg1: i32, %arg2: i32) -> (i32, i32, i32) {
    %c0_i32 = arith.constant 0 : i32
    %c0_i32_0 = arith.constant 0 : i32
    return %arg1, %arg2, %c0_i32 : i32, i32, i32
  }
  func.func @transform_4(%arg0: i32, %arg1: i32, %arg2: i32) -> (i32, i32, i32) {
    %c0_i32 = arith.constant 0 : i32
    %c0_i32_0 = arith.constant 0 : i32
    %c0_i32_1 = arith.constant 0 : i32
    return %arg1, %c0_i32, %c0_i32_0 : i32, i32, i32
  }
  func.func @transform_5(%arg0: i32, %arg1: i32, %arg2: i32) -> (i32, i32, i32) {
    %c0_i32 = arith.constant 0 : i32
    %c0_i32_0 = arith.constant 0 : i32
    %c0_i32_1 = arith.constant 0 : i32
    return %arg1, %c0_i32, %c0_i32_0 : i32, i32, i32
  }
  func.func @transform_6(%arg0: i32, %arg1: i32, %arg2: i32) -> (i32, i32, i32) {
    %c0_i32 = arith.constant 0 : i32
    %c0_i32_0 = arith.constant 0 : i32
    %c0_i32_1 = arith.constant 0 : i32
    return %arg1, %c0_i32, %c0_i32_0 : i32, i32, i32
  }
  func.func @transform_7(%arg0: i32, %arg1: i32, %arg2: i32) -> (i32, i32, i32) {
    %c0_i32 = arith.constant 0 : i32
    %c0_i32_0 = arith.constant 0 : i32
    %c0_i32_1 = arith.constant 0 : i32
    return %arg1, %c0_i32, %c0_i32_0 : i32, i32, i32
  }
  func.func @transform_8(%arg0: i32, %arg1: i32, %arg2: i32) -> (i32, i32, i32) {
    %c0_i32 = arith.constant 0 : i32
    %c0_i32_0 = arith.constant 0 : i32
    %c0_i32_1 = arith.constant 0 : i32
    return %arg1, %c0_i32, %c0_i32_0 : i32, i32, i32
  }
  func.func @transform_9(%arg0: i32, %arg1: i32, %arg2: i32) -> (i32, i32) {
    %c0_i32 = arith.constant 0 : i32
    %c0_i32_0 = arith.constant 0 : i32
    return %arg0, %c0_i32 : i32, i32
  }
}

</mosaic_0001>

<bundles_post_ra>
// kernel: _gpt2_forward_impl.3
= control target key start
LH: loop header
LB: loop body
LE: loop exit
PB: predicated region body
PF: predicated region fallthrough
CT: control target
= control target key end

     0   :  { %v449_v2 = vmov 0   ;;  %s581_s0 = inlined_call_operand.vmem [shape: f32[16,128], index: 0, kind: input, shape index: {}]   ;;  %s582_s1 = inlined_call_operand.vmem [shape: bf16[128,512], index: 1, kind: input, shape index: {}]   ;;  %s583_s2 = inlined_call_operand.vmem [shape: f32[1,512], index: 2, kind: input, shape index: {}]   ;;  %s584_s3 = inlined_call_operand.hbm [shape: f32[16,512], index: 3, kind: output, shape index: {}]  }
   0x1   :  { %v379_v0 = vld [vmem:[%s582_s1 + $0xe4] ss:$16 sps:$4 sm:$0xff]   ;;  %v381_v1 = vld [vmem:[%s582_s1 + $0xec] ss:$16 sps:$4 sm:$0xff]   ;;  %265 = vmatprep.mubr.bf16.mxu0 %v449_v2  ;;  %308 = vmatprep.mubr.bf16.mxu1 %v449_v2  ;;  %v383_v3 = vld [vmem:[%s582_s1 + $0xe0] ss:$16 sps:$4 sm:$0xff]  }
   0x2   :  { %233 = vmatprep.subr.bf16.mxu0 %v379_v0  ;;  %v384_v4 = vld [vmem:[%s582_s1 + $0xe8] ss:$16 sps:$4 sm:$0xff]   ;;  %276 = vmatprep.subr.bf16.mxu1 %v381_v1  ;;  %v385_v5 = vld [vmem:[%s582_s1 + $0xc4] ss:$16 sps:$4 sm:$0xff]   ;;  %v387_v6 = vld [vmem:[%s582_s1 + $0xcc] ss:$16 sps:$4 sm:$0xff]  }
   0x3   :  { %234 = vmatpush1.bf16.msra.mxu0 %v383_v3  ;;  %277 = vmatpush1.bf16.msra.mxu1 %v384_v4  ;;  %v389_v7 = vld [vmem:[%s582_s1 + $0xc0] ss:$16 sps:$4 sm:$0xff]   ;;  %v390_v8 = vld [vmem:[%s582_s1 + $0xc8] ss:$16 sps:$4 sm:$0xff]   ;;  %v391_v9 = vld [vmem:[%s582_s1 + $0xa4] ss:$16 sps:$4 sm:$0xff]  }
   0x4   :  { %235 = vmatprep.subr.bf16.mxu0 %v385_v5  ;;  %278 = vmatprep.subr.bf16.mxu1 %v387_v6  ;;  %v393_v10 = vld [vmem:[%s582_s1 + $0xac] ss:$16 sps:$4 sm:$0xff]   ;;  %v395_v11 = vld [vmem:[%s582_s1 + $0xa0] ss:$16 sps:$4 sm:$0xff]   ;;  %v396_v12 = vld [vmem:[%s582_s1 + $0xa8] ss:$16 sps:$4 sm:$0xff]  }
   0x5   :  { %v397_v13 = vld [vmem:[%s582_s1 + $0x84] ss:$16 sps:$4 sm:$0xff]   ;;  %v399_v14 = vld [vmem:[%s582_s1 + $0x8c] ss:$16 sps:$4 sm:$0xff]   ;;  %v401_v15 = vld [vmem:[%s582_s1 + $0x80] ss:$16 sps:$4 sm:$0xff]  }
   0x6   :  { %v402_v16 = vld [vmem:[%s582_s1 + $0x88] ss:$16 sps:$4 sm:$0xff]   ;;  %v403_v17 = vld [vmem:[%s582_s1 + $0x64] ss:$16 sps:$4 sm:$0xff]   ;;  %v405_v18 = vld [vmem:[%s582_s1 + $0x6c] ss:$16 sps:$4 sm:$0xff]  }
   0x7   :  { %236 = vmatpush1.bf16.msra.mxu0 %v389_v7  ;;  %279 = vmatpush1.bf16.msra.mxu1 %v390_v8  ;;  %v407_v19 = vld [vmem:[%s582_s1 + $0x60] ss:$16 sps:$4 sm:$0xff]   ;;  %v408_v20 = vld [vmem:[%s582_s1 + $0x68] ss:$16 sps:$4 sm:$0xff]   ;;  %v409_v21 = vld [vmem:[%s582_s1 + $0x44] ss:$16 sps:$4 sm:$0xff]  }
   0x8   :  { %237 = vmatprep.subr.bf16.mxu0 %v391_v9  ;;  %280 = vmatprep.subr.bf16.mxu1 %v393_v10  ;;  %v411_v22 = vld [vmem:[%s582_s1 + $0x4c] ss:$16 sps:$4 sm:$0xff]   ;;  %v413_v23 = vld [vmem:[%s582_s1 + $0x40] ss:$16 sps:$4 sm:$0xff]   ;;  %v414_v24 = vld [vmem:[%s582_s1 + $0x48] ss:$16 sps:$4 sm:$0xff]  }
   0x9   :  { %v415_v25 = vld [vmem:[%s582_s1 + $0x24] ss:$16 sps:$4 sm:$0xff]   ;;  %v417_v26 = vld [vmem:[%s582_s1 + $0x2c] ss:$16 sps:$4 sm:$0xff]  }
   0xb   :  { %238 = vmatpush1.bf16.msra.mxu0 %v395_v11  ;;  %281 = vmatpush1.bf16.msra.mxu1 %v396_v12 }
   0xc   :  { %239 = vmatprep.subr.bf16.mxu0 %v397_v13  ;;  %282 = vmatprep.subr.bf16.mxu1 %v399_v14 }
   0xf   :  { %240 = vmatpush1.bf16.msra.mxu0 %v401_v15  ;;  %283 = vmatpush1.bf16.msra.mxu1 %v402_v16 }
  0x10   :  { %241 = vmatprep.subr.bf16.mxu0 %v403_v17  ;;  %284 = vmatprep.subr.bf16.mxu1 %v405_v18 }
  0x13   :  { %242 = vmatpush1.bf16.msra.mxu0 %v407_v19  ;;  %285 = vmatpush1.bf16.msra.mxu1 %v408_v20 }
  0x14   :  { %243 = vmatprep.subr.bf16.mxu0 %v409_v21  ;;  %286 = vmatprep.subr.bf16.mxu1 %v411_v22 }
  0x15   :  { %8 = vsyncpa [#allocation3], 0  ;;  %v419_v27 = vld [vmem:[%s582_s1 + $0x20] ss:$16 sps:$4 sm:$0xff]   ;;  %v420_v28 = vld [vmem:[%s582_s1 + $0x28] ss:$16 sps:$4 sm:$0xff]   ;;  %v53_v36 = vlaneseq }
  0x16   :  { %v421_v29 = vld [vmem:[%s582_s1 + $0x4] ss:$16 sps:$4 sm:$0xff]   ;;  %v423_v30 = vld [vmem:[%s582_s1 + $0xc] ss:$16 sps:$4 sm:$0xff]   ;;  %v425_v31 = vld [vmem:[%s582_s1] ss:$16 sps:$4 sm:$0xff]  }
  0x17   :  { %244 = vmatpush1.bf16.msra.mxu0 %v413_v23  ;;  %287 = vmatpush1.bf16.msra.mxu1 %v414_v24  ;;  %v426_v32 = vld [vmem:[%s582_s1 + $0x8] ss:$16 sps:$4 sm:$0xff]   ;;  %v16_v33 = vld [vmem:[%s581_s0] sm:$0xff]  ;;  %v54_v37 = vshrl.u32 %v53_v36, 7 }
  0x18   :  { %245 = vmatprep.subr.bf16.mxu0 %v415_v25  ;;  %288 = vmatprep.subr.bf16.mxu1 %v417_v26  ;;  %v17_v34 = vld [vmem:[%s581_s0 + $0x8] sm:$0xff]  ;;  %v51_v40 = vld [vmem:[%s583_s2] sm:$0xf]  ;;  %s450_s0 = smov [#allocation2]  }
  0x19   :  { %v18_v35 = vpack.c.bf16 %v17_v34, %v16_v33  ;;  %v55_v38 = vsub.s32 0, %v54_v37  ;;  %v63_v39 = vsub.s32 2, %v54_v37  ;;  %v59_v41 = vsub.s32 1, %v54_v37  ;;  %s332_s27 = sshll.u32 %s450_s0, 4  ;;  %s333_s27 = int_to_ptr.vmem [resolvable:$true] %s332_s27 }
  0x1a   :  { %v67_v42 = vsub.s32 3, %v54_v37  ;;  %s427_s2 = scalar_lea.vmem %s333_s27, 1024  ;;  %p432_p1 = scmp.lt.s32.totalorder %s333_s27, %s333_s27 }
  0x1b   :  { %246 = vmatpush1.bf16.msra.mxu0 %v419_v27  ;;  %289 = vmatpush1.bf16.msra.mxu1 %v420_v28  ;;  %v56_v43 = vrot.slane %v51_v40, %v55_v38  ;;  %v64_v44 = vrot.slane %v51_v40, %v63_v39  ;;  %v60_v45 = vrot.slane %v51_v40, %v59_v41  ;;  %p428_p0 = scmp.ne.s32.totalorder %s333_s27, %s427_s2  ;;  %p433_p2 = scmp.lt.s32.totalorder %s427_s2, %s427_s2 }
  0x1c   :  { %247 = vmatprep.subr.bf16.mxu0 %v421_v29  ;;  %290 = vmatprep.subr.bf16.mxu1 %v423_v30  ;;  %v68_v46 = vrot.slane %v51_v40, %v67_v42 }
  0x1d   :  { %p434_p3 = por %p433_p2, %p432_p1 }
  0x1f   :  { %248 = vmatpush1.bf16.msra.mxu0 %v425_v31  ;;  %291 = vmatpush1.bf16.msra.mxu1 %v426_v32  ;;  %p435_p4 = pnand %p434_p3, %p428_p0 }
  0x22   :  { %266 = vmatmul.mubr.bf16.vlgmr.msra.gmra.mxu0 %v18_v35  ;;  %309 = vmatmul.mubr.bf16.vlgmr.msra.gmra.mxu1 %v18_v35 }
  0xe2   :  { %v267_v47 = vpop.f32.mrf.mxu0  ;;  %v310_v48 = vpop.f32.mrf.mxu1 }
  0xe3   :  { %v268_v49 = vadd.f32 %v267_v47, %v56_v43  ;;  %v311_v50 = vadd.f32 %v310_v48, %v64_v44 }
  0xe4   :  { %v269_v51 = vpop.f32.mrf.mxu0  ;;  %v312_v52 = vpop.f32.mrf.mxu1 }
  0xe5   :  { %319 = vst [vmem:[#allocation2] sm:$0xff] %v268_v49  ;;  %321 = vst [vmem:[#allocation2 + $0x10] sm:$0xff] %v311_v50  ;;  %v270_v53 = vadd.f32 %v269_v51, %v60_v45  ;;  %v313_v54 = vadd.f32 %v312_v52, %v68_v46 }
  0xe6   :  { %v271_v55 = vpop.f32.mrf.mxu0  ;;  %v314_v56 = vpop.f32.mrf.mxu1 }
  0xe7   :  { %320 = vst [vmem:[#allocation2 + $0x8] sm:$0xff] %v270_v53  ;;  %322 = vst [vmem:[#allocation2 + $0x18] sm:$0xff] %v313_v54  ;;  %v272_v57 = vadd.f32 %v271_v55, %v56_v43  ;;  %v315_v58 = vadd.f32 %v314_v56, %v64_v44 }
  0xe8   :  { %v273_v59 = vpop.f32.mrf.mxu0  ;;  %v316_v60 = vpop.f32.mrf.mxu1 }
  0xe9   :  { %323 = vst [vmem:[#allocation2 + $0x20] sm:$0xff] %v272_v57  ;;  %325 = vst [vmem:[#allocation2 + $0x30] sm:$0xff] %v315_v58  ;;  %v274_v61 = vadd.f32 %v273_v59, %v60_v45  ;;  %v317_v62 = vadd.f32 %v316_v60, %v68_v46 }
  0xeb   :  { %324 = vst [vmem:[#allocation2 + $0x28] sm:$0xff] %v274_v61  ;;  %326 = vst [vmem:[#allocation2 + $0x38] sm:$0xff] %v317_v62 }
  0xec   :  { %438 = shalt.err (!%p435_p4)
}
  0xed   :  { %s451_s28 = smov 512   ;;  %s452_s29 = smov 32  }
  0xee   :  { %338 = dma.vmem_to_hbm [thread:$0]  %s333_s27, 1024, %s584_s3, [#allocation3], %s451_s28, %s451_s28, %s452_s29  }
  0xef   :  { %447 = dma.done.wait [#allocation3], 1024  }
  0xf0   :  { %448 = vsyncadd [#allocation3], 4294966272 }
  0xf1   :  { %342 = vsyncpa [#allocation3], 1 }

// kernel: _gpt2_forward_impl.2
= control target key start
LH: loop header
LB: loop body
LE: loop exit
PB: predicated region body
PF: predicated region fallthrough
CT: control target
= control target key end

     0   :  { %s1826_s0 = inlined_call_operand.vmem [shape: f32[16,128], index: 0, kind: input, shape index: {}, may-alias: {0,9}]   ;;  %s1827_s1 = inlined_call_operand.hbm [shape: bf16[2,128,256], index: 1, kind: input, shape index: {}]   ;;  %s1828_s2 = inlined_call_operand.vmem [shape: f32[2,1,256], index: 2, kind: input, shape index: {}]   ;;  %s1829_s3 = inlined_call_operand.hbm [shape: bf16[2,256,128], index: 3, kind: input, shape index: {}]   ;;  %s1830_s4 = inlined_call_operand.vmem [shape: f32[2,1,128], index: 4, kind: input, shape index: {}]   ;;  %s1831_s5 = inlined_call_operand.vmem [shape: f32[2,1,128], index: 5, kind: input, shape index: {}]   ;;  %s1832_s6 = inlined_call_operand.vmem [shape: f32[2,1,128], index: 6, kind: input, shape index: {}]   ;;  %s1833_s7 = inlined_call_operand.vmem [shape: f32[2,1,128], index: 7, kind: input, shape index: {}]   ;;  %s1834_s8 = inlined_call_operand.vmem [shape: f32[2,1,128], index: 8, kind: input, shape index: {}]   ;;  %s1835_s9 = inlined_call_operand.vmem [shape: f32[16,128], index: 9, kind: output, shape index: {}, may-alias: {0,9}]  }
   0x1   :  { %1838 = sst [smem:[#allocation13_spill]] %s1827_s1 }
   0x2   :  { %1839 = sst [smem:[#allocation14_spill]] %s1829_s3 }
   0x3   :  { %14 = vsyncpa [#allocation5], 0 }
   0x4   :  { %16 = vsyncpa [#allocation5 + $0x1], 0 }
   0x5   :  { %17 = vsyncpa [#allocation7], 0 }
   0x6   :  { %19 = vsyncpa [#allocation7 + $0x1], 0  ;;  %s1576_s30 = smov 0   ;;  %s1578_s10 = smov 0  }
   0x7   :  { %s1580_s11 = smov 0   ;;  %s1582_s12 = smov 0  }
   0x8   :  { %s1584_s13 = smov 0   ;;  %s1586_s14 = smov 0  }
   0x9 LB: > { %1840 = sst [smem:[#allocation10_spill]] %s1505_s11  ;;  %s1202_s15 = sadd.s32 4294967295, %s1517_s14   ;;  %s1517_s14 = sphi %s1586_s14, %s25_s14   ;;  %s1513_s13 = sphi %s1584_s13, %s1855_s13   ;;  %s1509_s12 = sphi %s1582_s12, %s1854_s12   ;;  %s1505_s11 = sphi %s1580_s11, %s1850_s11   ;;  %s1501_s10 = sphi %s1578_s10, %s1853_s10   ;;  %s1497_s30 = sphi %s1576_s30, %s1852_s30  }
   0xa   : > { %s40_s16 = sadd.s32 1, %s1513_s13  ;;  %s79_s17 = sadd.s32 1, %s1505_s11 }
   0xb   : > { %p42_p0 = scmp.ge.s32.totalorder %s40_s16, 2  ;;  %p86_p1 = scmp.ne.s32.totalorder %s1505_s11, %s1501_s10 }
   0xc   : > { %p87_p2 = scmp.eq.s32.totalorder %s1517_s14, 0  ;;  %p92_p4 = scmp.ne.s32.totalorder %s1501_s10, %s1497_s30 }
   0xd   : > { %s1857_s16 = smov (%p42_p0, %s40_s16), 0  ;;  %p93_p5 = scmp.eq.s32.totalorder %s1202_s15, 0 }
   0xe   : > { %1841 = sst [smem:[#allocation11_spill]] %s1857_s16  ;;  %p1612_p3 = por %p87_p2, %p86_p1 }
   0xf   : > { %s74_s19 = ssub.s32 %s1513_s13, %s1857_s16  ;;  %p1619_p7 = por %p93_p5, %p92_p4 }
  0x10   : > { %p77_p6 = scmp.eq.s32.totalorder %s74_s19, 0  ;;  %p1304_p8 = scmp.lt.s32.totalorder %s1517_s14, 2 }
  0x11   : > { %s1628_s22 = sand.u32 1, %s1505_s11   ;;  %s1261_s23 = sshll.u32 %s1513_s13, 11 }
  0x12   : > { %s1625_s21 = scalar_select %p77_p6, %s1505_s11, %s79_s17  }
  0x13   : > { %s1206_s24 = sshll.u32 %s1628_s22, 7  ;;  %s1845_s1 = sld [smem:[#allocation13_spill]] }
  0x14   : > { %1844 = sst [smem:[#allocation12_spill]] %s1625_s21  ;;  %s341_s28 = scalar_lea.vmem [#allocation4], %s1206_s24 }
  0x15   : > { %s350_s29 = sshll.u32 %s341_s28, 4  ;;  %p1639_p9 = pnand %p1304_p8, %p1612_p3  ;;  %s351_s29 = int_to_ptr.vmem [resolvable:$true] %s350_s29 }
  0x16   : > { %s338_s15 = scalar_lea.sflag [#allocation5], %s1628_s22  ;;  %s1420_s17 = scalar_lea.vmem %s351_s29, 2048 }
  0x17   : > { %p1409_p10 = pneg %p1639_p9  ;;  %p1421_p11 = scmp.ne.s32.totalorder %s351_s29, %s1420_s17 }
  0x18   : > { %s1519_s19 = smov [#allocation4]  }
  0x19   : > { %s349_s27 = scalar_lea.hbm %s1845_s1, %s1261_s23  ;;  %p1423_p12 = pnand %p1421_p11, %p1409_p10 }
  0x1a   : > { %s1425_s25 = sshll.u32 %s1519_s19, 4  ;;  %s1426_s25 = int_to_ptr.vmem [resolvable:$false] %s1425_s25 }
  0x1b   : > { %p1424_p13 = pneg %p1423_p12  ;;  %s1427_s18 = scalar_lea.vmem %s1426_s25, 4096 }
  0x1c   : > { %p1428_p0 = scmp.lt.s32.totalorder %s351_s29, %s1426_s25  ;;  %p1429_p1 = scmp.lt.s32.totalorder %s1427_s18, %s1420_s17 }
  0x1e   : > { %p1430_p2 = por %p1429_p1, %p1428_p0 }
  0x20   : > { %p1431_p3 = pnand %p1430_p2, %p1424_p13 }
  0x22   : > { %1434 = shalt.err (!%p1431_p3)
}
  0x23   : > { %s1520_s26 = smov 128   ;;  %s1521_s28 = smov 8  }
  0x24   : > { %1300 = dma.hbm_to_vmem [thread:$0]  (!%p1639_p9), %s349_s27, 2048, %s351_s29, %s338_s15, %s1520_s26, %s1520_s26, %s1521_s28  }
  0x25   : > { %p1212_p4 = scmp.ge.s32.totalorder %s1517_s14, 1  ;;  %p423_p5 = scmp.lt.s32.totalorder %s1517_s14, 3 }
  0x26   : > { %s1848_s3 = sld [smem:[#allocation14_spill]]  ;;  %s376_s1 = scalar_lea.vmem [#allocation6], %s1206_s24 }
  0x27   : > { %p1653_p6 = pnand %p1212_p4, %p423_p5  ;;  %s385_s16 = sshll.u32 %s376_s1, 4  ;;  %s386_s16 = int_to_ptr.vmem [resolvable:$true] %s385_s16 }
  0x28   : > { %s373_s21 = scalar_lea.sflag [#allocation7], %s1628_s22  ;;  %s1448_s11 = scalar_lea.vmem %s386_s16, 2048 }
  0x29   : > { %p1449_p8 = scmp.ne.s32.totalorder %s386_s16, %s1448_s11  ;;  %s1522_s27 = smov [#allocation6]  }
  0x2a   : > { %s1453_s29 = sshll.u32 %s1522_s27, 4  ;;  %s1454_s29 = int_to_ptr.vmem [resolvable:$false] %s1453_s29 }
  0x2b   : > { %p1451_p11 = pnand %p1449_p8, %p1409_p10  ;;  %s1455_s15 = scalar_lea.vmem %s1454_s29, 4096 }
  0x2c   : > { %s384_s18 = scalar_lea.hbm %s1848_s3, %s1261_s23  ;;  %p1456_p13 = scmp.lt.s32.totalorder %s386_s16, %s1454_s29 }
  0x2d   : > { %p1452_p12 = pneg %p1451_p11  ;;  %p1457_p0 = scmp.lt.s32.totalorder %s1455_s15, %s1448_s11 }
  0x2f   : > { %p1458_p1 = por %p1457_p0, %p1456_p13 }
  0x31   : > { %p1459_p2 = pnand %p1458_p1, %p1452_p12 }
  0x33   : > { %1462 = shalt.err (!%p1459_p2)
}
  0x34   : > { %s1523_s23 = smov 64   ;;  %s1524_s1 = smov 4  }
  0x35   : > { %1303 = dma.hbm_to_vmem [thread:$0]  (!%p1639_p9), %s384_s18, 2048, %s386_s16, %s373_s21, %s1523_s23, %s1523_s23, %s1524_s1  }
  0x36   : > { %427 = sbr.rel (%p1653_p6) target bundleno = 830 (0x33e), region = 56  ;;  %s429_s22 = sand.u32 (!%p1653_p6), 1, %s1501_s10  }
  0x37   : > { %s1213_s24 = sshll.u32 (!%p1653_p6), %s429_s22, 7  ;;  %s430_s26 = scalar_lea.sflag (!%p1653_p6), [#allocation5], %s429_s22 }
  0x38   : > { %s1671_s28 = scalar_lea.vmem (!%p1653_p6), [#allocation4], %s1213_s24 }
  0x3b   : > { %1488 = dma.done.wait (%p1619_p7), %s430_s26, 2048  }
  0x3c   : > { %1490 = vsyncadd (%p1619_p7), %s430_s26, 4294965248  ;;  %s439_s11 = scalar_lea.sflag [#allocation7], %s429_s22  ;;  %s1677_s17 = scalar_lea.vmem [#allocation6], %s1213_s24 }
  0x3d   : > { %1492 = dma.done.wait (%p1619_p7), %s439_s11, 2048  }
  0x3e   : > { %1494 = vsyncadd (%p1619_p7), %s439_s11, 4294965248  ;;  %p518_p9 = scmp.lt.s32.totalorder %s1509_s12, 1  ;;  %p549_p10 = scmp.eq.s32.totalorder %s1509_s12, 0 }
  0x3f   : > { %v555_v0 = vld [vmem:[%s1826_s0] sm:$0xff] (%p549_p10)  ;;  %v556_v1 = vld [vmem:[%s1826_s0 + $0x8] sm:$0xff] (%p549_p10) }
  0x40   : > { %s1859_s12 = smov (!%p518_p9, %s1509_s12), 1  ;;  %554 = sbr.rel (!%p549_p10) target bundleno = 69 (0x45), region = 68  ;;  %557 = vst [vmem:[%s1835_s9] sm:$0xff] (%p549_p10), %v555_v0  ;;  %558 = vst [vmem:[%s1835_s9 + $0x8] sm:$0xff] (%p549_p10), %v556_v1 }
  0x41   : > { %s1215_s16 = sshll.u32 %s1859_s12, 1  ;;  %s529_s19 = scalar_lea.vmem %s1830_s4, %s1859_s12 }
  0x42   : > { %s1696_s18 = scalar_lea.vmem %s1828_s2, %s1215_s16  ;;  %s532_s15 = scalar_lea.vmem %s1831_s5, %s1859_s12 }
  0x43   : > { %s535_s22 = scalar_lea.vmem %s1832_s6, %s1859_s12  ;;  %s538_s11 = scalar_lea.vmem %s1833_s7, %s1859_s12 }
  0x44   : > { %s541_s30 = scalar_lea.vmem %s1834_s8, %s1859_s12 }
  0x45 PF: > { %v1358_v6 = vld [vmem:[%s1671_s28 + $0x74] ss:$8 sps:$4 sm:$0xff]   ;;  %v1360_v7 = vld [vmem:[%s1671_s28 + $0x70] ss:$8 sps:$4 sm:$0xff]   ;;  %v1361_v8 = vld [vmem:[%s1671_s28 + $0x64] ss:$8 sps:$4 sm:$0xff]  }
  0x46   : > { %746 = vmatprep.subr.bf16.mxu0 %v1358_v6  ;;  %v1363_v9 = vld [vmem:[%s1671_s28 + $0x60] ss:$8 sps:$4 sm:$0xff]   ;;  %v1364_v10 = vld [vmem:[%s1671_s28 + $0x54] ss:$8 sps:$4 sm:$0xff]   ;;  %v1366_v11 = vld [vmem:[%s1671_s28 + $0x50] ss:$8 sps:$4 sm:$0xff]  }
  0x47   : > { %v1729_v2 = vld [vmem:[%s1835_s9] sm:$0xff]  ;;  %v1734_v3 = vld [vmem:[%s1835_s9 + $0x8] sm:$0xff]  ;;  %747 = vmatpush1.bf16.msra.mxu0 %v1360_v7  ;;  %v1525_v22 = vmov 0   ;;  %v1385_v25 = vld [vmem:[%s1677_s17 + $0x70] sm:$0xff]  }
  0x48   : > { %564 = vadd.xlane.f32.xlu0 %v1729_v2  ;;  %v571_v4 = vmul.f32 %v1729_v2, %v1729_v2  ;;  %v572_v5 = vmul.f32 %v1734_v3, %v1734_v3  ;;  %748 = vmatprep.subr.bf16.mxu0 %v1361_v8  ;;  %v1367_v12 = vld [vmem:[%s1671_s28 + $0x44] ss:$8 sps:$4 sm:$0xff]   ;;  %v1369_v13 = vld [vmem:[%s1671_s28 + $0x40] ss:$8 sps:$4 sm:$0xff]   ;;  %v1370_v14 = vld [vmem:[%s1671_s28 + $0x34] ss:$8 sps:$4 sm:$0xff]  }
  0x49   : > { %v1372_v15 = vld [vmem:[%s1671_s28 + $0x30] ss:$8 sps:$4 sm:$0xff]   ;;  %v1373_v16 = vld [vmem:[%s1671_s28 + $0x24] ss:$8 sps:$4 sm:$0xff]   ;;  %v1375_v17 = vld [vmem:[%s1671_s28 + $0x20] ss:$8 sps:$4 sm:$0xff]   ;;  %778 = vmatprep.mubr.bf16.mxu0 %v1525_v22 }
  0x4a   : > { %573 = vadd.xlane.f32.xlu1 %v571_v4  ;;  %v1376_v18 = vld [vmem:[%s1671_s28 + $0x14] ss:$8 sps:$4 sm:$0xff]   ;;  %v1378_v19 = vld [vmem:[%s1671_s28 + $0x10] ss:$8 sps:$4 sm:$0xff]   ;;  %v1379_v20 = vld [vmem:[%s1671_s28 + $0x4] ss:$8 sps:$4 sm:$0xff]  }
  0x4b   : > { %749 = vmatpush1.bf16.msra.mxu0 %v1363_v9  ;;  %v1381_v21 = vld [vmem:[%s1671_s28] ss:$8 sps:$4 sm:$0xff]   ;;  %v1383_v23 = vld [vmem:[%s1677_s17 + $0x78] sm:$0xff]   ;;  %v1386_v26 = vld [vmem:[%s1677_s17 + $0x30] sm:$0xff]  }
  0x4c   : > { %566 = vadd.xlane.f32.xlu0 %v1734_v3  ;;  %750 = vmatprep.subr.bf16.mxu0 %v1364_v10  ;;  %v1384_v24 = vld [vmem:[%s1677_s17 + $0x38] sm:$0xff]   ;;  %v1387_v27 = vld [vmem:[%s1677_s17 + $0x68] sm:$0xff]   ;;  %v1389_v29 = vld [vmem:[%s1677_s17 + $0x60] sm:$0xff]  }
  0x4d   : > { %1271 = vmatprep.subr.bf16.mxu1 %v1383_v23  ;;  %v1388_v28 = vld [vmem:[%s1677_s17 + $0x28] sm:$0xff]   ;;  %v1390_v30 = vld [vmem:[%s1677_s17 + $0x20] sm:$0xff]   ;;  %v1391_v31 = vld [vmem:[%s1677_s17 + $0x58] sm:$0xff]  }
  0x4e   : > { %575 = vadd.xlane.f32.xlu1 %v572_v5  ;;  %1272 = vmatpush3.bf16.msra.mxu1 %v1384_v24  ;;  %v1392_v32 = vld [vmem:[%s1677_s17 + $0x18] sm:$0xff]   ;;  %v1393_v61 = vld [vmem:[%s1677_s17 + $0x50] sm:$0xff]   ;;  %v1395_v63 = vld [vmem:[%s1677_s17 + $0x48] sm:$0xff]  }
  0x4f   : > { %751 = vmatpush1.bf16.msra.mxu0 %v1366_v11  ;;  %1273 = vmatprep.subr.bf16.mxu1 %v1385_v25  ;;  %v1217_v50 = vld [vmem:[%s532_s15] ss:$0 sm:$0xff]  ;;  %v1394_v62 = vld [vmem:[%s1677_s17 + $0x10] sm:$0xff]   ;;  %v1396_v0 = vld [vmem:[%s1677_s17 + $0x8] sm:$0xff]  }
  0x50   : > { %752 = vmatprep.subr.bf16.mxu0 %v1367_v12  ;;  %v1218_v55 = vld [vmem:[%s535_s22] ss:$0 sm:$0xff]  ;;  %v1397_v1 = vld [vmem:[%s1677_s17 + $0x40] sm:$0xff]  }
  0x51   : > { %v648_v7 = vld [vmem:[%s1696_s18] sm:$0x3] }
  0x52   : > { %1274 = vmatpush3.bf16.msra.mxu1 %v1386_v26  ;;  %v1221_v25 = vld [vmem:[%s529_s19] ss:$0 sm:$0xff] }
  0x53   : > { %753 = vmatpush1.bf16.msra.mxu0 %v1369_v13  ;;  %1275 = vmatprep.subr.bf16.mxu1 %v1387_v27 }
  0x54   : > { %754 = vmatprep.subr.bf16.mxu0 %v1370_v14 }
  0x56   : > { %1276 = vmatpush3.bf16.msra.mxu1 %v1388_v28 }
  0x57   : > { %755 = vmatpush1.bf16.msra.mxu0 %v1372_v15  ;;  %1277 = vmatprep.subr.bf16.mxu1 %v1389_v29 }
  0x58   : > { %756 = vmatprep.subr.bf16.mxu0 %v1373_v16 }
  0x5a   : > { %1278 = vmatpush3.bf16.msra.mxu1 %v1390_v30 }
  0x5b   : > { %757 = vmatpush1.bf16.msra.mxu0 %v1375_v17  ;;  %1279 = vmatprep.subr.bf16.mxu1 %v1391_v31 }
  0x5c   : > { %758 = vmatprep.subr.bf16.mxu0 %v1376_v18 }
  0x5e   : > { %1280 = vmatpush3.bf16.msra.mxu1 %v1392_v32 }
  0x5f   : > { %759 = vmatpush1.bf16.msra.mxu0 %v1378_v19  ;;  %1281 = vmatprep.subr.bf16.mxu1 %v1393_v61 }
  0x60   : > { %760 = vmatprep.subr.bf16.mxu0 %v1379_v20 }
  0x62   : > { %1282 = vmatpush3.bf16.msra.mxu1 %v1394_v62 }
  0x63   : > { %761 = vmatpush1.bf16.msra.mxu0 %v1381_v21  ;;  %1283 = vmatprep.subr.bf16.mxu1 %v1395_v63 }
  0x66   : > { %1284 = vmatpush3.bf16.msra.mxu1 %v1396_v0 }
  0x67   : > { %1285 = vmatprep.subr.bf16.mxu1 %v1397_v1 }
  0xd1   : > { %v565_v33 = vpop.xlane.xlu0 %564 }
  0xd2   : > { %v569_v34 = vmul.f32 0.0078125, %v565_v33 }
  0xd3   : > { %v574_v35 = vpop.xlane.xlu1 %573 }
  0xd4   : > { %v579_v36 = vmul.f32 %v569_v34, %v569_v34  ;;  %v577_v37 = vmul.f32 0.0078125, %v574_v35  ;;  %v583_v47 = vsub.f32 %v1729_v2, %v569_v34  ;;  %v1398_v2 = vld [vmem:[%s1677_s17] sm:$0xff]  }
  0xd5   : > { %v567_v38 = vpop.xlane.xlu0 %566  ;;  %1286 = vmatpush3.bf16.msra.mxu1 %v1398_v2 }
  0xd6   : > { %v581_v39 = vsub.f32 %v577_v37, %v579_v36  ;;  %v570_v40 = vmul.f32 0.0078125, %v567_v38 }
  0xd7   : > { %v576_v41 = vpop.xlane.xlu1 %575 }
  0xd8   : > { %v585_v42 = vadd.f32 1e-05, %v581_v39  ;;  %v580_v43 = vmul.f32 %v570_v40, %v570_v40  ;;  %v578_v44 = vmul.f32 0.0078125, %v576_v41  ;;  %v584_v51 = vsub.f32 %v1734_v3, %v570_v40 }
  0xd9   : > { %v650_v3 = vlaneseq }
  0xda   : > { %1399 = vrsqrt.f32 %v585_v42  ;;  %v582_v45 = vsub.f32 %v578_v44, %v580_v43 }
  0xdb   : > { %v651_v4 = vshrl.u32 %v650_v3, 7 }
  0xdc   : > { %v586_v46 = vadd.f32 1e-05, %v582_v45 }
  0xdd   : > { %v656_v5 = vsub.s32 1, %v651_v4  ;;  %v652_v6 = vsub.s32 0, %v651_v4 }
  0xde   : > { %1401 = vrsqrt.f32 %v586_v46 }
  0xdf   : > { %v657_v9 = vrot.slane %v648_v7, %v656_v5  ;;  %v653_v10 = vrot.slane %v648_v7, %v652_v6 }
  0xe7   : > { %v1400_v48 = vpop.eup %1399 }
  0xe8   : > { %v589_v49 = vmul.f32 %v1400_v48, %v583_v47 }
  0xea   : > { %v598_v53 = vmul.f32 %v1217_v50, %v589_v49 }
  0xeb   : > { %v1402_v52 = vpop.eup %1401 }
  0xec   : > { %v590_v54 = vmul.f32 %v1402_v52, %v584_v51  ;;  %v607_v57 = vadd.f32 %v1218_v55, %v598_v53  ;;  %v1255_v53 = vld [vmem:[%s538_s11] ss:$0 sm:$0xff] }
  0xee   : > { %v599_v56 = vmul.f32 %v1217_v50, %v590_v54  ;;  %v626_v27 = vadd.f32 %v1221_v25, %v607_v57 }
  0xf0   : > { %v608_v58 = vadd.f32 %v1218_v55, %v599_v56  ;;  %v1256_v55 = vld [vmem:[%s541_s30] ss:$0 sm:$0xff] }
  0xf2   : > { %v1269_v59 = vpack.c.bf16 %v608_v58, %v607_v57  ;;  %v627_v32 = vadd.f32 %v1221_v25, %v608_v58 }
  0xf4   : > { %1270 = vst [vmem:[#allocation2] sm:$0xff] %v1269_v59  }
  0xfb   : > { %v1382_v60 = vld [vmem:[#allocation2] sm:$0xff]  }
  0xfc   : > { %779 = vmatmul.mubr.bf16.vlgmr.msra.gmra.mxu0 %v1382_v60 }
 0x1bc   : > { %v780_v8 = vpop.f32.mrf.mxu0 }
 0x1bd   : > { %v781_v15 = vadd.f32 %v780_v8, %v653_v10 }
 0x1be   : > { %v782_v11 = vpop.f32.mrf.mxu0 }
 0x1bf   : > { %v783_v13 = vadd.f32 %v782_v11, %v657_v9  ;;  %v789_v21 = vmax.f32 %v781_v15, 0.0 }
 0x1c0   : > { %v784_v12 = vpop.f32.mrf.mxu0 }
 0x1c1   : > { %v785_v14 = vadd.f32 %v784_v12, %v653_v10  ;;  %v790_v19 = vmax.f32 %v783_v13, 0.0 }
 0x1c2   : > { %v786_v16 = vpop.f32.mrf.mxu0 }
 0x1c3   : > { %v787_v17 = vadd.f32 %v786_v16, %v657_v9  ;;  %v791_v18 = vmax.f32 %v785_v14, 0.0 }
 0x1c5   : > { %v792_v20 = vmax.f32 %v787_v17, 0.0  ;;  %v795_v23 = vpack.c.bf16 %v791_v18, %v789_v21 }
 0x1c7   : > { %v796_v22 = vpack.c.bf16 %v792_v20, %v790_v19 }
 0x1c9   : > { %957 = vmatprep.mubr.bf16.mxu1 %v796_v22 }
 0x1ca   : > { %958 = vmatmul.mubr.bf16.vlgmr.msra.gmra.mxu1 %v795_v23 }
 0x28a   : > { %v1287_v24 = vpop.f32.mrf.mxu1 }
 0x28c   : > { %v1288_v26 = vpop.f32.mrf.mxu1 }
 0x28d   : > { %v1289_v28 = vadd.f32 %v1288_v26, %v1287_v24 }
 0x28e   : > { %v1290_v29 = vpop.f32.mrf.mxu1 }
 0x28f   : > { %v966_v30 = vadd.f32 %v1289_v28, %v626_v27 }
 0x290   : > { %v1291_v31 = vpop.f32.mrf.mxu1 }
 0x291   : > { %v1292_v33 = vadd.f32 %v1291_v31, %v1290_v29  ;;  %975 = vadd.xlane.f32.xlu0 %v966_v30  ;;  %v982_v35 = vmul.f32 %v966_v30, %v966_v30 }
 0x293   : > { %v967_v34 = vadd.f32 %v1292_v33, %v627_v32 }
 0x295   : > { %977 = vadd.xlane.f32.xlu1 %v967_v34  ;;  %984 = vadd.xlane.f32.xlu0 %v982_v35  ;;  %v983_v36 = vmul.f32 %v967_v34, %v967_v34 }
 0x299   : > { %986 = vadd.xlane.f32.xlu1 %v983_v36 }
 0x31a   : > { %v976_v37 = vpop.xlane.xlu0 %975 }
 0x31b   : > { %v980_v38 = vmul.f32 0.0078125, %v976_v37 }
 0x31d   : > { %v990_v41 = vmul.f32 %v980_v38, %v980_v38  ;;  %v994_v51 = vsub.f32 %v966_v30, %v980_v38 }
 0x31e   : > { %v978_v39 = vpop.xlane.xlu1 %977  ;;  %v985_v40 = vpop.xlane.xlu0 %984 }
 0x31f   : > { %v981_v42 = vmul.f32 0.0078125, %v978_v39  ;;  %v988_v43 = vmul.f32 0.0078125, %v985_v40 }
 0x321   : > { %v992_v44 = vsub.f32 %v988_v43, %v990_v41  ;;  %v991_v46 = vmul.f32 %v981_v42, %v981_v42  ;;  %v995_v56 = vsub.f32 %v967_v34, %v981_v42 }
 0x322   : > { %v987_v45 = vpop.xlane.xlu1 %986 }
 0x323   : > { %v996_v47 = vadd.f32 1e-05, %v992_v44  ;;  %v989_v48 = vmul.f32 0.0078125, %v987_v45 }
 0x325   : > { %1403 = vrsqrt.f32 %v996_v47  ;;  %v993_v49 = vsub.f32 %v989_v48, %v991_v46 }
 0x327   : > { %v997_v50 = vadd.f32 1e-05, %v993_v49 }
 0x329   : > { %1405 = vrsqrt.f32 %v997_v50 }
 0x332   : > { %v1404_v52 = vpop.eup %1403 }
 0x333   : > { %v1000_v54 = vmul.f32 %v1404_v52, %v994_v51 }
 0x335   : > { %v1009_v57 = vmul.f32 %v1255_v53, %v1000_v54 }
 0x336   : > { %v1406_v58 = vpop.eup %1405 }
 0x337   : > { %v1018_v59 = vadd.f32 %v1256_v55, %v1009_v57  ;;  %v1001_v60 = vmul.f32 %v1406_v58, %v995_v56 }
 0x339   : > { %1020 = vst [vmem:[%s1835_s9] sm:$0xff] %v1018_v59  ;;  %v1010_v61 = vmul.f32 %v1255_v53, %v1001_v60 }
 0x33b   : > { %v1019_v62 = vadd.f32 %v1256_v55, %v1010_v61 }
 0x33d   : > { %1021 = vst [vmem:[%s1835_s9 + $0x8] sm:$0xff] %v1019_v62 }
 0x33e PF: > { %s25_s14 = sadd.s32 1, %s1517_s14   ;;  %s1849_s12 = sld [smem:[#allocation10_spill]] }
 0x33f   : > { %p22_p7 = scmp.ge.s32.totalorder %s25_s14, 4   ;;  %s1850_s11 = sld [smem:[#allocation12_spill]] }
 0x340   : > { %s1851_s26 = sld [smem:[#allocation11_spill]]  ;;  %s1852_s30 = smov %s1501_s10 }
 0x342   :  { %24 = sbr.rel (!%p22_p7) target bundleno = 9 (0x9), region = 142 }
 0x344   : > { %s1853_s10 = smov %s1849_s12  ;;  %s1854_s12 = smov %s1513_s13 }
 0x346   : > { %s1855_s13 = smov %s1851_s26 }
 0x347   :  { %1044 = vsyncpa [#allocation5], 1 }
 0x348   :  { %1046 = vsyncpa [#allocation5 + $0x1], 1 }
 0x349   :  { %1047 = vsyncpa [#allocation7], 1 }
 0x34a   :  { %1049 = vsyncpa [#allocation7 + $0x1], 1 }

</bundles_post_ra>
